<compile_context>
chip_gen: v5e
topology: v5e:2x2
jax: 0.10.0
libtpu: 0.0.40
codegen_flags: <defaults>
</compile_context>

<pallas_src>
import jax
import jax.numpy as jnp
from jax.experimental import pallas as pl
from jax.experimental.pallas import tpu as pltpu


def _round_up(n, m):
    return ((n + m - 1) // m) * m


# ---------------- in-kernel math ----------------
def _erf(z):
    """Abramowitz & Stegun 7.1.26 erf polynomial (f32, literal constants only)."""
    a1, a2, a3, a4, a5 = 0.254829592, -0.284496736, 1.421413741, -1.453152027, 1.061405429
    p = 0.3275911
    az = jnp.abs(z)
    # On hardware this divide could be pl.reciprocal(..., approx=True) (EUP slot);
    # a plain divide keeps interpret-mode support and exactness.
    t = 1.0 / (1.0 + p * az)
    poly = ((((a5 * t + a4) * t + a3) * t + a2) * t + a1) * t
    y = 1.0 - poly * jnp.exp(-(az * az))
    return jnp.where(z < 0.0, -y, y)


def _gelu(v):
    """Exact (erf-based) GELU, matching torch.nn.GELU() default."""
    return 0.5 * v * (1.0 + _erf(v * 0.7071067811865476))


# ---------------- fused Residual(Linear -> GELU -> Linear) kernel ----------------
def _residual_mlp_kernel(x_ref, w1_ref, b1_ref, w2_ref, b2_ref, o_ref, acc_ref):
    k = pl.program_id(1)                    # hidden-tile (reduction) index

    @pl.when(k == 0)
    def _init():
        acc_ref[...] = jnp.zeros_like(acc_ref)

    x = x_ref[...]                                      # (tb, D), native dtype
    xb = x.astype(jnp.bfloat16)                         # MXU input, f32 accumulation
    h = jnp.dot(xb, w1_ref[...].astype(jnp.bfloat16),
                preferred_element_type=jnp.float32)     # (tb, th)
    h = _gelu(h + b1_ref[...])                          # bias + exact GELU, f32
    acc_ref[...] += jnp.dot(h.astype(jnp.bfloat16),
                            w2_ref[...].astype(jnp.bfloat16),
                            preferred_element_type=jnp.float32)

    @pl.when(k == pl.num_programs(1) - 1)
    def _finalize():
        out = acc_ref[...] + b2_ref[...] + x.astype(jnp.float32)   # fused residual add
        o_ref[...] = out.astype(o_ref.dtype)


# ---------------- per-generation tile selection ----------------
def _pick_tiles(B, D, H, x_bytes, out_bytes, w_bytes):
    try:
        kind = jax.devices()[0].device_kind.lower()
    except Exception:
        kind = ""
    if "v5" in kind:              # v5e: 4x128^2 MXU, small default scoped VMEM
        tb_cap, budget = 128, 96 << 20
    elif "7" in kind:             # v7x: 64 MiB VMEM per TC, 2 TensorCores
        tb_cap, budget = 256, 44 << 20
    else:                         # v6e / unknown: 128 MiB VMEM headroom
        tb_cap, budget = 512, 96 << 20

    th_cands = [c for c in (512, 256, 128) if c <= H and H % c == 0]
    if not th_cands:
        raise ValueError("hidden width H must be a multiple of 128")

    # >=2 batch grid steps when B allows (v7x dual-TC sharding + DMA/compute overlap)
    tb0 = _round_up(B, 8) if B < 16 else min(tb_cap, _round_up(-(-B // 2), 8))

    def need(tb, th):
        return (2 * tb * D * x_bytes                 # x tiles (double buffered)
                + 2 * tb * D * out_bytes             # output tiles
                + 2 * (D * th + th * D) * w_bytes    # W1 / W2 hidden tiles
                + 2 * 8 * (th + D) * 4               # bias rows (sublane padded)
                + tb * D * 4)                        # f32 accumulator scratch

    for th in th_cands:
        tb = tb0
        while tb > 8 and need(tb, th) > budget:
            tb = max(8, _round_up(tb // 2, 8))
        if need(tb, th) <= budget:
            return tb, th, need(tb, th), budget
    th = th_cands[-1]
    return 8, th, need(8, th), budget


# ---------------- wrapper ----------------
def residual_mlp_forward(x, w1, b1, w2, b2, *, out_dtype=None):
    """Residual(Linear->GELU->Linear).forward(x) = fn(x) + x, fused in one pallas_call."""
    B, D = x.shape
    Dw, H = w1.shape
    assert Dw == D and w2.shape == (H, D) and b1.shape == (H,) and b2.shape == (D,)
    assert D % 128 == 0, "pad the feature axis to a multiple of 128 in the caller"
    out_dtype = x.dtype if out_dtype is None else jnp.dtype(out_dtype)

    # biases as unpacked (1, N) rows (works for any H != D), f32 for in-kernel math
    b1r = b1.reshape(1, H).astype(jnp.float32)
    b2r = b2.reshape(1, D).astype(jnp.float32)

    x_bytes = x.dtype.itemsize
    out_bytes = jnp.dtype(out_dtype).itemsize
    w_bytes = w1.dtype.itemsize
    tb, th, need, budget = _pick_tiles(B, D, H, x_bytes, out_bytes, w_bytes)
    gb, gh = pl.cdiv(B, tb), H // th

    vmem_limit = int(min(budget, max(2 * need + (4 << 20), 32 << 20)))

    cost = pl.CostEstimate(
        flops=int(4 * B * D * H + 12 * B * H + 2 * B * D),
        transcendentals=int(2 * B * H),                        # exp + divide per hidden elem
        bytes_accessed=int(B * D * (x_bytes + out_bytes)
                           + 2 * D * H * w_bytes + (H + D) * 4),
    )

    grid_spec = pltpu.PrefetchScalarGridSpec(
        num_scalar_prefetch=0,
        grid=(gb, gh),                                         # reduction axis last
        in_specs=[
            pl.BlockSpec((tb, D), lambda i, k: (i, 0)),        # x: resident across k
            pl.BlockSpec((D, th), lambda i, k: (0, k)),        # W1 hidden tile
            pl.BlockSpec((1, th), lambda i, k: (0, k)),        # b1 hidden tile
            pl.BlockSpec((th, D), lambda i, k: (k, 0)),        # W2 hidden tile
            pl.BlockSpec((1, D), lambda i, k: (0, 0)),         # b2 (grid-invariant)
        ],
        out_specs=pl.BlockSpec((tb, D), lambda i, k: (i, 0)),  # accumulator pattern
        scratch_shapes=[pltpu.VMEM((tb, D), jnp.float32)],
    )

    return pl.pallas_call(
        _residual_mlp_kernel,
        out_shape=jax.ShapeDtypeStruct((B, D), out_dtype),
        grid_spec=grid_spec,
        compiler_params=pltpu.CompilerParams(
            dimension_semantics=("parallel", "arbitrary"),
            vmem_limit_bytes=vmem_limit),
        cost_estimate=cost,
    )(x, w1, b1r, w2, b2r)


# ---------------- demo / self-test ----------------
if __name__ == "__main__":
    import math

    key = jax.random.PRNGKey(0)
    kx, kw1, kb1, kw2, kb2 = jax.random.split(key, 5)

    # B is NOT a multiple of the batch tile (exercises the ragged tail), H != D
    # (exercises unpacked biases), and H spans several hidden tiles (exercises the
    # accumulator init/finalize path).
    B, D, H = 20, 128, 384
    bound1 = 1.0 / math.sqrt(D)
    bound2 = 1.0 / math.sqrt(H)
    w1 = jax.random.uniform(kw1, (D, H), jnp.float32, -bound1, bound1)
    b1 = jax.random.uniform(kb1, (H,), jnp.float32, -bound1, bound1)
    w2 = jax.random.uniform(kw2, (H, D), jnp.float32, -bound2, bound2)
    b2 = jax.random.uniform(kb2, (D,), jnp.float32, -bound2, bound2)
    x = jax.random.normal(kx, (B, D), jnp.float32)

    # One-time param prep: weights stored in bf16 (half the weight DMA bytes).
    w1_bf = w1.astype(jnp.bfloat16)
    w2_bf = w2.astype(jnp.bfloat16)

    out = residual_mlp_forward(x, w1_bf, b1, w2_bf, b2)
    jax.block_until_ready(out)

    # pure-JAX f32 reference of Residual(fn).forward(x) = fn(x) + x
    ref = jax.nn.gelu(x @ w1 + b1, approximate=False) @ w2 + b2 + x

    assert out.shape == (B, D) and out.dtype == jnp.float32
    max_diff = float(jnp.max(jnp.abs(out - ref)))
    # tolerance covers bf16 MXU inputs (f32 accumulation) and the erf polynomial
    assert jnp.allclose(out, ref, atol=2e-2, rtol=2e-2), f"max diff {max_diff}"
    print("KERNEL_OK")
</pallas_src>

<mosaic_0001>
module attributes {stable_mosaic.version = 11 : i64} {
  func.func @_residual_mlp_kernel(%arg0: i32, %arg1: i32, %arg2: memref<16x128xf32, #tpu.memory_space<vmem>>, %arg3: memref<128x128xbf16, #tpu.memory_space<vmem>>, %arg4: memref<1x128xf32, #tpu.memory_space<vmem>>, %arg5: memref<128x128xbf16, #tpu.memory_space<vmem>>, %arg6: memref<1x128xf32, #tpu.memory_space<vmem>>, %arg7: memref<16x128xf32, #tpu.memory_space<vmem>>, %arg8: memref<16x128xf32, #tpu.memory_space<vmem>>) attributes {dimension_semantics = [#tpu.dimension_semantics<parallel>, #tpu.dimension_semantics<arbitrary>], iteration_bounds = array<i64: 2, 3>, scalar_prefetch = 0 : i64, scratch_operands = 1 : i64, tpu.core_type = #tpu.core_type<tc>, window_params = [{transform_indices = @transform_0, window_bounds = array<i64: 16, 128>}, {transform_indices = @transform_1, window_bounds = array<i64: 128, 128>}, {transform_indices = @transform_2, window_bounds = array<i64: 1, 128>}, {transform_indices = @transform_3, window_bounds = array<i64: 128, 128>}, {pipeline_mode = #tpu.pipeline_mode<synchronous>, transform_indices = @transform_4, window_bounds = array<i64: 1, 128>}, {transform_indices = @transform_5, window_bounds = array<i64: 16, 128>}]} {
    %c0_i32 = arith.constant 0 : i32
    %0 = arith.cmpi eq, %arg1, %c0_i32 : i32
    %1 = arith.extui %0 : i1 to i32
    %c0_i32_0 = arith.constant 0 : i32
    %2 = arith.cmpi ne, %1, %c0_i32_0 : i32
    scf.if %2 {
      %cst_29 = arith.constant 0.000000e+00 : f32
      %59 = vector.broadcast %cst_29 : f32 to vector<16x128xf32>
      %c0_30 = arith.constant 0 : index
      %c0_31 = arith.constant 0 : index
      %60 = vector.load %arg8[%c0_30, %c0_31] : memref<16x128xf32, #tpu.memory_space<vmem>>, vector<16x128xf32>
      tpu.vector_store %arg8[%c0_30, %c0_31], %59 {strides = array<i32>} : memref<16x128xf32, #tpu.memory_space<vmem>>, vector<16x128xf32>,
    } else {
    }
    %c0 = arith.constant 0 : index
    %c0_1 = arith.constant 0 : index
    %3 = vector.load %arg2[%c0, %c0_1] : memref<16x128xf32, #tpu.memory_space<vmem>>, vector<16x128xf32>
    %4 = arith.truncf %3 : vector<16x128xf32> to vector<16x128xbf16>
    %c0_2 = arith.constant 0 : index
    %c0_3 = arith.constant 0 : index
    %5 = vector.load %arg3[%c0_2, %c0_3] : memref<128x128xbf16, #tpu.memory_space<vmem>>, vector<128x128xbf16>
    %cst = arith.constant dense<0.000000e+00> : vector<16x128xf32>
    %6 = tpu.matmul %4, %5, %cst {dimension_numbers = #tpu.dot_dimension_numbers<[1], [0], [0], [1], [0, 0, 1, 1], [], []>} : vector<16x128xbf16>, vector<128x128xbf16>, vector<16x128xf32> -> vector<16x128xf32>
    %c0_4 = arith.constant 0 : index
    %c0_5 = arith.constant 0 : index
    %7 = vector.load %arg4[%c0_4, %c0_5] : memref<1x128xf32, #tpu.memory_space<vmem>>, vector<1x128xf32>
    %8 = vector.broadcast %7 : vector<1x128xf32> to vector<16x128xf32>
    %9 = arith.addf %6, %8 : vector<16x128xf32>
    %cst_6 = arith.constant 5.000000e-01 : f32
    %10 = vector.broadcast %cst_6 : f32 to vector<16x128xf32>
    %11 = arith.mulf %10, %9 : vector<16x128xf32>
    %cst_7 = arith.constant 0.707106769 : f32
    %12 = vector.broadcast %cst_7 : f32 to vector<16x128xf32>
    %13 = arith.mulf %9, %12 : vector<16x128xf32>
    %14 = math.absf %13 : vector<16x128xf32>
    %cst_8 = arith.constant 0.327591091 : f32
    %15 = vector.broadcast %cst_8 : f32 to vector<16x128xf32>
    %16 = arith.mulf %15, %14 : vector<16x128xf32>
    %cst_9 = arith.constant 1.000000e+00 : f32
    %17 = vector.broadcast %cst_9 : f32 to vector<16x128xf32>
    %18 = arith.addf %17, %16 : vector<16x128xf32>
    %cst_10 = arith.constant 1.000000e+00 : f32
    %19 = vector.broadcast %cst_10 : f32 to vector<16x128xf32>
    %20 = arith.divf %19, %18 : vector<16x128xf32>
    %cst_11 = arith.constant 1.06140542 : f32
    %21 = vector.broadcast %cst_11 : f32 to vector<16x128xf32>
    %22 = arith.mulf %21, %20 : vector<16x128xf32>
    %cst_12 = arith.constant -1.45315206 : f32
    %23 = vector.broadcast %cst_12 : f32 to vector<16x128xf32>
    %24 = arith.addf %22, %23 : vector<16x128xf32>
    %25 = arith.mulf %24, %20 : vector<16x128xf32>
    %cst_13 = arith.constant 1.42141378 : f32
    %26 = vector.broadcast %cst_13 : f32 to vector<16x128xf32>
    %27 = arith.addf %25, %26 : vector<16x128xf32>
    %28 = arith.mulf %27, %20 : vector<16x128xf32>
    %cst_14 = arith.constant -0.284496725 : f32
    %29 = vector.broadcast %cst_14 : f32 to vector<16x128xf32>
    %30 = arith.addf %28, %29 : vector<16x128xf32>
    %31 = arith.mulf %30, %20 : vector<16x128xf32>
    %cst_15 = arith.constant 0.254829586 : f32
    %32 = vector.broadcast %cst_15 : f32 to vector<16x128xf32>
    %33 = arith.addf %31, %32 : vector<16x128xf32>
    %34 = arith.mulf %33, %20 : vector<16x128xf32>
    %35 = arith.mulf %14, %14 : vector<16x128xf32>
    %cst_16 = arith.constant 0.000000e+00 : f32
    %36 = vector.broadcast %cst_16 : f32 to vector<16x128xf32>
    %37 = arith.subf %36, %35 : vector<16x128xf32>
    %38 = math.exp %37 : vector<16x128xf32>
    %39 = arith.mulf %34, %38 : vector<16x128xf32>
    %cst_17 = arith.constant 1.000000e+00 : f32
    %40 = vector.broadcast %cst_17 : f32 to vector<16x128xf32>
    %41 = arith.subf %40, %39 : vector<16x128xf32>
    %cst_18 = arith.constant 0.000000e+00 : f32
    %42 = vector.broadcast %cst_18 : f32 to vector<16x128xf32>
    %43 = arith.cmpf olt, %13, %42 : vector<16x128xf32>
    %cst_19 = arith.constant 0.000000e+00 : f32
    %44 = vector.broadcast %cst_19 : f32 to vector<16x128xf32>
    %45 = arith.subf %44, %41 : vector<16x128xf32>
    %46 = arith.select %43, %45, %41 : vector<16x128xi1>, vector<16x128xf32>
    %cst_20 = arith.constant 1.000000e+00 : f32
    %47 = vector.broadcast %cst_20 : f32 to vector<16x128xf32>
    %48 = arith.addf %47, %46 : vector<16x128xf32>
    %49 = arith.mulf %11, %48 : vector<16x128xf32>
    %c0_21 = arith.constant 0 : index
    %c0_22 = arith.constant 0 : index
    %50 = vector.load %arg8[%c0_21, %c0_22] : memref<16x128xf32, #tpu.memory_space<vmem>>, vector<16x128xf32>
    %51 = arith.truncf %49 : vector<16x128xf32> to vector<16x128xbf16>
    %c0_23 = arith.constant 0 : index
    %c0_24 = arith.constant 0 : index
    %52 = vector.load %arg5[%c0_23, %c0_24] : memref<128x128xbf16, #tpu.memory_space<vmem>>, vector<128x128xbf16>
    %cst_25 = arith.constant dense<0.000000e+00> : vector<16x128xf32>
    %53 = tpu.matmul %51, %52, %cst_25 {dimension_numbers = #tpu.dot_dimension_numbers<[1], [0], [0], [1], [0, 0, 1, 1], [], []>} : vector<16x128xbf16>, vector<128x128xbf16>, vector<16x128xf32> -> vector<16x128xf32>
    %54 = arith.addf %50, %53 : vector<16x128xf32>
    %c0_26 = arith.constant 0 : index
    %c0_27 = arith.constant 0 : index
    %55 = vector.load %arg8[%c0_26, %c0_27] : memref<16x128xf32, #tpu.memory_space<vmem>>, vector<16x128xf32>
    tpu.vector_store %arg8[%c0_26, %c0_27], %54 {strides = array<i32>} : memref<16x128xf32, #tpu.memory_space<vmem>>, vector<16x128xf32>,
    %c2_i32 = arith.constant 2 : i32
    %56 = arith.cmpi eq, %arg1, %c2_i32 : i32
    %57 = arith.extui %56 : i1 to i32
    %c0_i32_28 = arith.constant 0 : i32
    %58 = arith.cmpi ne, %57, %c0_i32_28 : i32
    scf.if %58 {
      %c0_29 = arith.constant 0 : index
      %c0_30 = arith.constant 0 : index
      %59 = vector.load %arg8[%c0_29, %c0_30] : memref<16x128xf32, #tpu.memory_space<vmem>>, vector<16x128xf32>
      %c0_31 = arith.constant 0 : index
      %c0_32 = arith.constant 0 : index
      %60 = vector.load %arg6[%c0_31, %c0_32] : memref<1x128xf32, #tpu.memory_space<vmem>>, vector<1x128xf32>
      %61 = vector.broadcast %60 : vector<1x128xf32> to vector<16x128xf32>
      %62 = arith.addf %59, %61 : vector<16x128xf32>
      %63 = arith.addf %62, %3 : vector<16x128xf32>
      %c0_33 = arith.constant 0 : index
      %c0_34 = arith.constant 0 : index
      %64 = vector.load %arg7[%c0_33, %c0_34] : memref<16x128xf32, #tpu.memory_space<vmem>>, vector<16x128xf32>
      tpu.vector_store %arg7[%c0_33, %c0_34], %63 {strides = array<i32>} : memref<16x128xf32, #tpu.memory_space<vmem>>, vector<16x128xf32>,
    } else {
    }
    return
  }
  func.func @transform_0(%arg0: i32, %arg1: i32) -> (i32, i32) {
    %c0_i32 = arith.constant 0 : i32
    %c0_i32_0 = arith.constant 0 : i32
    return %arg0, %c0_i32 : i32, i32
  }
  func.func @transform_1(%arg0: i32, %arg1: i32) -> (i32, i32) {
    %c0_i32 = arith.constant 0 : i32
    %c0_i32_0 = arith.constant 0 : i32
    return %c0_i32, %arg1 : i32, i32
  }
  func.func @transform_2(%arg0: i32, %arg1: i32) -> (i32, i32) {
    %c0_i32 = arith.constant 0 : i32
    %c0_i32_0 = arith.constant 0 : i32
    return %c0_i32, %arg1 : i32, i32
  }
  func.func @transform_3(%arg0: i32, %arg1: i32) -> (i32, i32) {
    %c0_i32 = arith.constant 0 : i32
    %c0_i32_0 = arith.constant 0 : i32
    return %arg1, %c0_i32 : i32, i32
  }
  func.func @transform_4(%arg0: i32, %arg1: i32) -> (i32, i32) {
    %c0_i32 = arith.constant 0 : i32
    %c0_i32_0 = arith.constant 0 : i32
    %c0_i32_1 = arith.constant 0 : i32
    return %c0_i32, %c0_i32_0 : i32, i32
  }
  func.func @transform_5(%arg0: i32, %arg1: i32) -> (i32, i32) {
    %c0_i32 = arith.constant 0 : i32
    %c0_i32_0 = arith.constant 0 : i32
    return %arg0, %c0_i32 : i32, i32
  }
}

</mosaic_0001>

<bundles_post_ra>
// kernel: tpu_custom_call.1
= control target key start
LH: loop header
LB: loop body
LE: loop exit
PB: predicated region body
PF: predicated region fallthrough
CT: control target
= control target key end

     0   :  { %s1731_s0 = inlined_call_operand.hbm [shape: f32[20,128], index: 0, kind: input, shape index: {}]   ;;  %s1732_s1 = inlined_call_operand.hbm [shape: bf16[128,384], index: 1, kind: input, shape index: {}]   ;;  %s1733_s2 = inlined_call_operand.hbm [shape: f32[1,384], index: 2, kind: input, shape index: {}]   ;;  %s1734_s3 = inlined_call_operand.hbm [shape: bf16[384,128], index: 3, kind: input, shape index: {}]   ;;  %s1735_s4 = inlined_call_operand.vmem [shape: f32[1,128], index: 4, kind: input, shape index: {}]   ;;  %s1736_s5 = inlined_call_operand.hbm [shape: f32[20,128], index: 5, kind: output, shape index: {}]  }
   0x1   :  { %1749 = sst [smem:[#allocation27_spill]] %s1731_s0 }
   0x2   :  { %1750 = sst [smem:[#allocation28_spill]] %s1732_s1 }
   0x3   :  { %1751 = sst [smem:[#allocation29_spill]] %s1735_s4 }
   0x4   :  { %1752 = sst [smem:[#allocation30_spill]] %s1736_s5 }
   0x5   :  { %10 = vsyncpa [#allocation4], 0 }
   0x6   :  { %12 = vsyncpa [#allocation4 + $0x1], 0 }
   0x7   :  { %13 = vsyncpa [#allocation7], 0 }
   0x8   :  { %15 = vsyncpa [#allocation7 + $0x1], 0 }
   0x9   :  { %16 = vsyncpa [#allocation10], 0 }
   0xa   :  { %18 = vsyncpa [#allocation10 + $0x1], 0 }
   0xb   :  { %19 = vsyncpa [#allocation5], 0 }
   0xc   :  { %21 = vsyncpa [#allocation5 + $0x1], 0  ;;  %s1371_s18 = smov 0   ;;  %s1373_s19 = smov 0  }
   0xd   :  { %s1375_s20 = smov 0   ;;  %s1377_s21 = smov 0  }
   0xe   :  { %s1379_s22 = smov 0   ;;  %s1381_s23 = smov 0  }
   0xf   :  { %s1383_s24 = smov 0   ;;  %s1385_s25 = smov 0  }
  0x10   :  { %s1387_s26 = smov 0   ;;  %s1389_s27 = smov 0  }
  0x11   :  { %s1391_s28 = smov 0  }
  0x12 LB: > { %1753 = sst [smem:[#allocation16_spill]] %s1297_s20  ;;  %s1427_s29 = sadd.s32 4294967295, %s1329_s28   ;;  %s1329_s28 = sphi %s1391_s28, %s27_s28   ;;  %s1325_s27 = sphi %s1389_s27, %s1788_s27   ;;  %s1321_s26 = sphi %s1387_s26, %s1794_s26   ;;  %s1317_s25 = sphi %s1385_s25, %s1786_s25   ;;  %s1313_s24 = sphi %s1383_s24, %s1793_s24   ;;  %s1309_s23 = sphi %s1381_s23, %s1785_s23   ;;  %s1305_s22 = sphi %s1379_s22, %s1792_s22   ;;  %s1301_s21 = sphi %s1377_s21, %s1791_s21   ;;  %s1297_s20 = sphi %s1375_s20, %s1783_s20   ;;  %s1293_s19 = sphi %s1373_s19, %s1790_s19   ;;  %s1289_s18 = sphi %s1371_s18, %s1789_s18  }
  0x13   : > { %1754 = sst [smem:[#allocation17_spill]] %s1301_s21  ;;  %s832_s30 = sadd.s32 4294967294, %s1329_s28  }
  0x14   : > { %1755 = sst [smem:[#allocation18_spill]] %s1309_s23  ;;  %s36_s6 = sadd.s32 1, %s1321_s26 }
  0x15   : > { %1756 = sst [smem:[#allocation19_spill]] %s1317_s25  ;;  %s39_s7 = sadd.s32 1, %s1325_s27 }
  0x16   : > { %1757 = sst [smem:[#allocation20_spill]] %s1325_s27  ;;  %p37_p0 = scmp.ge.s32.totalorder %s36_s6, 3 }
  0x17   : > { %s46_s8 = sadd.s32 1, %s1309_s23  ;;  %p53_p1 = scmp.ne.s32.totalorder %s1309_s23, %s1305_s22 }
  0x18   : > { %p54_p2 = scmp.eq.s32.totalorder %s1329_s28, 0  ;;  %s1796_s6 = smov (%p37_p0, %s36_s6), 0 }
  0x19   : > { %1758 = sst [smem:[#allocation21_spill]] %s1796_s6  ;;  %s1798_s7 = smov (!%p37_p0, %s39_s7), %s1325_s27 }
  0x1a   : > { %p1444_p3 = por %p54_p2, %p53_p1  ;;  %p1737_p4 = scmp.ne.s32.totalorder %s1305_s22, %s1301_s21 }
  0x1b   : > { %p41_p5 = scmp.ge.s32.totalorder %s1798_s7, 2  ;;  %p60_p6 = scmp.eq.s32.totalorder %s1427_s29, 0 }
  0x1c   : > { %s69_s10 = ssub.s32 %s1321_s26, %s1796_s6  ;;  %s72_s11 = sadd.s32 1, %s1297_s20 }
  0x1d   : > { %s1800_s7 = smov (%p41_p5, %s1798_s7), 0  ;;  %p1461_p7 = por %p60_p6, %p1737_p4 }
  0x1e   : > { %1760 = sst [smem:[#allocation22_spill]] %s1800_s7  ;;  %p70_p8 = scmp.eq.s32.totalorder %s69_s10, 0 }
  0x1f   : > { %s43_s13 = ssub.s32 %s1325_s27, %s1800_s7  ;;  %p79_p9 = scmp.ne.s32.totalorder %s1297_s20, %s1293_s19 }
  0x20   : > { %p44_p10 = scmp.eq.s32.totalorder %s43_s13, 0  ;;  %p85_p11 = scmp.ne.s32.totalorder %s1293_s19, %s1289_s18 }
  0x21   : > { %s1472_s14 = scalar_select %p70_p8, %s1297_s20, %s72_s11  }
  0x22   : > { %s1475_s15 = scalar_select %p44_p10, %s1309_s23, %s46_s8  }
  0x23   : > { %1762 = sst [smem:[#allocation23_spill]] %s1472_s14  ;;  %p1479_p12 = por %p79_p9, %p54_p2 }
  0x24   : > { %1763 = sst [smem:[#allocation24_spill]] %s1475_s15  ;;  %p1485_p13 = por %p85_p11, %p60_p6 }
  0x25   : > { %p182_p0 = scmp.eq.s32.totalorder %s1427_s29, 5  ;;  %p188_p5 = scmp.eq.s32.totalorder %s832_s30, 5 }
  0x26   : > { %p1768_p8 = scmp.ne.s32.totalorder %s1305_s22, %s1301_s21  ;;  %p834_p2 = scmp.ge.s32.totalorder %s1329_s28, 6 }
  0x27   : > { %p1493_p4 = por %p182_p0, %p53_p1 }
  0x28   : > { %p1500_p10 = por %p188_p5, %p1768_p8  ;;  %207 = sbr.rel (%p834_p2) target bundleno = 103 (0x67), region = 20 }
  0x29   : > { %s1766_s10 = scalar_select %p1493_p4, 1, 0 }
  0x2a   : > { %s1769_s18 = scalar_select %p1500_p10, 1, 0 }
  0x2b   : > { %1767 = sst [smem:[#allocation25_spill]] %s1766_s10 }
  0x2c   : > { %1770 = sst [smem:[#allocation26_spill]] %s1769_s18 }
  0x2d   : > { %210 = sbr.rel (!%p1444_p3) target bundleno = 88 (0x58), region = 24  ;;  %s211_s8 = sand.u32 (%p1444_p3), 1, %s1309_s23  }
  0x2e   : > { %s836_s30 = sshll.u32 (%p1444_p3), %s1325_s27, 1  ;;  %s835_s11 = sshll.u32 (%p1444_p3), %s211_s8, 4 }
  0x2f   : > { %s217_s13 = ssub.s32 (%p1444_p3), 3, %s836_s30  ;;  %s1512_s14 = scalar_lea.sflag (%p1444_p3), [#allocation4], %s211_s8 }
  0x30   : > { %p218_p1 = scmp.lt.s32.totalorder (%p1444_p3), %s217_s13, 2  ;;  %s215_s18 = scalar_lea.vmem (%p1444_p3), [#allocation3], %s835_s11 }
  0x32   : > { %s1802_s13 = smov (!%p218_p1, %s217_s13), 2 }
  0x33   : > { %s837_s7 = sshll.u32 %s1802_s13, 3 }
  0x34   : > { %s221_s6 = ssub.s32 16, %s837_s7 }
  0x35   : > { %s222_s15 = sshll.u32 %s221_s6, 4 }
  0x36   : > { %223 = vsyncadd %s1512_s14, %s222_s15  ;;  %p1515_p3 = scmp.ne.s32.totalorder %s837_s7, 0  ;;  %s927_s30 = sshll.u32 %s1325_s27, 4 }
  0x37   : > { %s1772_s0 = sld [smem:[#allocation27_spill]]  ;;  %s1523_s25 = sshll.u32 %s215_s18, 4  ;;  %s231_s25 = int_to_ptr.vmem [resolvable:$true] %s1523_s25 }
  0x38   : > { %s1745_s15 = sshll.u32 %s1802_s13, 7 }
  0x39   : > { %s1067_s7 = sshrl.u32 %s1745_s15, 4 }
  0x3d   : > { %s226_s5 = scalar_lea.hbm %s1772_s0, %s927_s30  ;;  %s1076_s18 = scalar_lea.hbm %s1772_s0, 24 }
  0x3e   : > { %s228_s6 = sshll.u32 %s226_s5, 4  ;;  %s1526_s6 = int_to_ptr.hbm [resolvable:$true] %s228_s6 }
  0x3f   : > { %s1065_s8 = sshra.s32 %s1526_s6, 4  ;;  %s1066_s8 = int_to_ptr.hbm [resolvable:$true] %s1065_s8 }
  0x40   : > { %s1072_s11 = scalar_lea.hbm %s1066_s8, %s1067_s7 }
  0x41   : > { %p1073_p6 = scmp.ne.s32.totalorder %s1066_s8, %s1072_s11  ;;  %p1078_p0 = scmp.lt.s32.totalorder %s1076_s18, %s1072_s11 }
  0x43   : > { %p1074_p9 = pnand %p1073_p6, %p1515_p3 }
  0x45   : > { %p1075_p11 = pneg %p1074_p9 }
  0x47   : > { %p1080_p5 = pnand %p1078_p0, %p1075_p11 }
  0x49   : > { %1083 = shalt.err (!%p1080_p5)
}
  0x4a   : > { %s1084_s5 = sshra.s32 %s231_s25, 4  ;;  %s1331_s8 = smov [#allocation3]   ;;  %s1085_s5 = int_to_ptr.vmem [resolvable:$true] %s1084_s5 }
  0x4b   : > { %s1091_s30 = scalar_lea.vmem %s1085_s5, %s1067_s7  ;;  %s1095_s15 = scalar_lea.vmem %s1331_s8, 32 }
  0x4c   : > { %p1092_p8 = scmp.ne.s32.totalorder %s1085_s5, %s1091_s30  ;;  %p1097_p6 = scmp.lt.s32.totalorder %s1095_s15, %s1091_s30 }
  0x4e   : > { %p1093_p2 = pnand %p1092_p8, %p1515_p3 }
  0x50   : > { %p1094_p1 = pneg %p1093_p2 }
  0x52   : > { %p1099_p9 = pnand %p1097_p6, %p1094_p1 }
  0x54   : > { %1102 = shalt.err (!%p1099_p9)
}
  0x55   : > { %s1332_s21 = smov 128   ;;  %s1333_s11 = smov 8  }
  0x56   : > { %s1773_s23 = sshll.u32 %s1802_s13, 7 }
  0x57   : > { %236 = dma.hbm_to_vmem [thread:$0]  (%p1515_p3), %s1526_s6, %s1773_s23, %s231_s25, %s1512_s14, %s1332_s21, %s1332_s21, %s1333_s11  }
  0x58 PF: > { %s240_s15 = sand.u32 1, %s1329_s28   ;;  %s1551_s7 = sand.u32 1, %s1297_s20  }
  0x59   : > { %s842_s18 = sshll.u32 %s1551_s7, 6  ;;  %s843_s5 = sshll.u32 %s1321_s26, 2 }
  0x5a   : > { %s1774_s1 = sld [smem:[#allocation28_spill]]  ;;  %s244_s0 = scalar_lea.vmem [#allocation6], %s842_s18 }
  0x5b   : > { %s251_s25 = sshll.u32 %s244_s0, 4  ;;  %s241_s13 = scalar_lea.sflag [#allocation7], %s240_s15  ;;  %s252_s25 = int_to_ptr.vmem [resolvable:$true] %s251_s25 }
  0x5c   : > { %s1334_s6 = smov 192   ;;  %s1335_s21 = smov 64  }
  0x5d   : > { %s1336_s11 = smov 4   ;;  %s267_s30 = scalar_lea.hbm %s1733_s2, %s1321_s26 }
  0x5e   : > { %s264_s8 = scalar_lea.vmem [#allocation8], %s1551_s7  ;;  %s928_s0 = sshll.u32 %s1321_s26, 6 }
  0x5f   : > { %s282_s15 = scalar_lea.vmem [#allocation9], %s842_s18  ;;  %s287_s4 = scalar_lea.hbm %s1734_s3, %s928_s0 }
  0x60   : > { %s248_s9 = scalar_lea.hbm %s1774_s1, %s843_s5  ;;  %s269_s5 = sshll.u32 %s267_s30, 4  ;;  %s270_s5 = int_to_ptr.hbm [resolvable:$true] %s269_s5 }
  0x61   : > { %s249_s14 = sshll.u32 %s248_s9, 4  ;;  %s271_s1 = sshll.u32 %s264_s8, 4  ;;  %s250_s14 = int_to_ptr.hbm [resolvable:$true] %s249_s14  ;;  %s272_s1 = int_to_ptr.vmem [resolvable:$true] %s271_s1 }
  0x62   : > { %946 = dma.hbm_to_vmem [thread:$0]  (%p1479_p12), %s250_s14, 1024, %s252_s25, %s241_s13, %s1334_s6, %s1335_s21, %s1336_s11  }
  0x63   : > { %947 = dma.hbm_to_vmem [thread:$0]  (%p1479_p12), %s270_s5, 16, %s272_s1, %s241_s13  }
  0x64   : > { %s290_s9 = sshll.u32 %s282_s15, 4  ;;  %s288_s25 = sshll.u32 %s287_s4, 4  ;;  %s291_s9 = int_to_ptr.vmem [resolvable:$true] %s290_s9  ;;  %s289_s25 = int_to_ptr.hbm [resolvable:$true] %s288_s25 }
  0x65   : > { %s279_s27 = scalar_lea.sflag [#allocation10], %s1551_s7 }
  0x66   : > { %948 = dma.hbm_to_vmem [thread:$0]  (%p1479_p12), %s289_s25, 1024, %s291_s9, %s279_s27, %s1335_s21, %s1335_s21, %s1336_s11  }
  0x67 PF: > { %p847_p3 = scmp.ge.s32.totalorder %s1329_s28, 1  ;;  %p298_p11 = scmp.lt.s32.totalorder %s1329_s28, 7 }
  0x69   : > { %p299_p0 = pnand %p847_p3, %p298_p11 }
  0x6a   : > { %s1577_s1 = sand.u32 (!%p299_p0), 1, %s1305_s22  }
  0x6b   : > { %302 = sbr.rel (%p299_p0) target bundleno = 545 (0x221), region = 40  ;;  %s848_s20 = sshll.u32 (!%p299_p0), %s1577_s1, 4 }
  0x6c   : > { %s305_s10 = scalar_lea.sflag (!%p299_p0), [#allocation4], %s1577_s1  ;;  %s1581_s4 = scalar_lea.vmem (!%p299_p0), [#allocation3], %s848_s20 }
  0x70   : > { %1272 = dma.done.wait (%p1461_p7), %s305_s10, 256  }
  0x71   : > { %1274 = vsyncadd (%p1461_p7), %s305_s10, 4294967040  ;;  %s314_s16 = sand.u32 1, %s1427_s29   ;;  %s1589_s7 = sand.u32 1, %s1293_s19  }
  0x72   : > { %s849_s18 = sshll.u32 %s1589_s7, 6  ;;  %s315_s14 = scalar_lea.sflag [#allocation7], %s314_s16 }
  0x73   : > { %s318_s13 = scalar_lea.vmem [#allocation6], %s849_s18 }
  0x74   : > { %1276 = dma.done.wait (%p1485_p13), %s315_s14, 1040  }
  0x75   : > { %1278 = vsyncadd (%p1485_p13), %s315_s14, 4294966256  ;;  %s327_s12 = scalar_lea.vmem [#allocation8], %s1589_s7  ;;  %s334_s6 = scalar_lea.sflag [#allocation10], %s1589_s7 }
  0x76   : > { %s1598_s21 = scalar_lea.vmem [#allocation9], %s849_s18 }
  0x77   : > { %1280 = dma.done.wait (%p1485_p13), %s334_s6, 1024  }
  0x78   : > { %1282 = vsyncadd (%p1485_p13), %s334_s6, 4294966272  ;;  %s1604_s29 = scalar_lea.vmem [#allocation11], %s848_s20  ;;  %p852_p7 = scmp.ne.s32.totalorder %s1313_s24, 0 }
  0x7a   : > { %393 = sbr.rel (%p852_p7) target bundleno = 130 (0x82), region = 60 }
  0x7f   : > { %v1337_v0 = vmov 0.0  }
  0x80   : > { %394 = vst [vmem:[#allocation2] sm:$0xff] %v1337_v0 }
  0x81   : > { %395 = vst [vmem:[#allocation2 + $0x8] sm:$0xff] %v1337_v0 }
  0x82 PF: > { %v936_v1 = vld [vmem:[%s318_s13 + $0x38] sm:$0xff]  ;;  %v935_v2 = vld [vmem:[%s318_s13 + $0x30] sm:$0xff]  ;;  %v934_v3 = vld [vmem:[%s318_s13 + $0x28] sm:$0xff]  ;;  %p917_p12 = scmp.ne.s32.totalorder %s1313_s24, 2 }
  0x83   : > { %467 = vmatpush.bf16.msra.mxu0 %v936_v1  ;;  %v933_v4 = vld [vmem:[%s318_s13 + $0x20] sm:$0xff]  ;;  %v932_v5 = vld [vmem:[%s318_s13 + $0x18] sm:$0xff]  ;;  %v931_v6 = vld [vmem:[%s318_s13 + $0x10] sm:$0xff]  ;;  %s1775_s23 = sld [smem:[#allocation29_spill]] (!%p917_p12) }
  0x84   : > { %v930_v7 = vld [vmem:[%s318_s13 + $0x8] sm:$0xff]  ;;  %v929_v8 = vld [vmem:[%s318_s13] sm:$0xff]  ;;  %v1055_v12 = vld [vmem:[%s327_s12] ss:$0 sm:$0xff] }
  0x85   : > { %v1608_v9 = vld [vmem:[%s1581_s4] sm:$0xff]  ;;  %v1611_v10 = vld [vmem:[%s1581_s4 + $0x8] sm:$0xff] }
  0x86   : > { %v398_v11 = vpack.c.bf16 %v1611_v10, %v1608_v9  ;;  %v944_v15 = vld [vmem:[%s1598_s21 + $0x38] sm:$0xff]  ;;  %v943_v17 = vld [vmem:[%s1598_s21 + $0x30] sm:$0xff]  ;;  %v942_v20 = vld [vmem:[%s1598_s21 + $0x28] sm:$0xff] }
  0x87   : > { %468 = vmatpush.bf16.msra.mxu0 %v935_v2  ;;  %628 = vmatpush.bf16.msra.mxu1 %v944_v15  ;;  %v941_v24 = vld [vmem:[%s1598_s21 + $0x20] sm:$0xff]  ;;  %v940_v27 = vld [vmem:[%s1598_s21 + $0x18] sm:$0xff]  ;;  %v939_v32 = vld [vmem:[%s1598_s21 + $0x10] sm:$0xff] }
  0x88   : > { %v938_v37 = vld [vmem:[%s1598_s21 + $0x8] sm:$0xff]  ;;  %v937_v44 = vld [vmem:[%s1598_s21] sm:$0xff] }
  0x8b   : > { %469 = vmatpush.bf16.msra.mxu0 %v934_v3  ;;  %629 = vmatpush.bf16.msra.mxu1 %v943_v17 }
  0x8f   : > { %470 = vmatpush.bf16.msra.mxu0 %v933_v4  ;;  %630 = vmatpush.bf16.msra.mxu1 %v942_v20 }
  0x93   : > { %471 = vmatpush.bf16.msra.mxu0 %v932_v5  ;;  %631 = vmatpush.bf16.msra.mxu1 %v941_v24 }
  0x97   : > { %472 = vmatpush.bf16.msra.mxu0 %v931_v6  ;;  %632 = vmatpush.bf16.msra.mxu1 %v940_v27 }
  0x9b   : > { %473 = vmatpush.bf16.msra.mxu0 %v930_v7  ;;  %633 = vmatpush.bf16.msra.mxu1 %v939_v32 }
  0x9f   : > { %474 = vmatpush.bf16.msra.mxu0 %v929_v8  ;;  %634 = vmatpush.bf16.msra.mxu1 %v938_v37 }
  0xa2   : > { %475 = vmatmul.bf16.vlgmr.msra.gmra.mxu0 %v398_v11 }
  0xa3   : > { %635 = vmatpush.bf16.msra.mxu1 %v937_v44 }
 0x11f   : > { %v476_v13 = vpop.f32.mrf.mxu0 }
 0x120   : > { %v1617_v14 = vadd.f32 %v1055_v12, %v476_v13 }
 0x122   : > { %v1621_v16 = vmul.f32 0.70710677, %v1617_v14 }
 0x124   : > { %v485_v18 = vand.u32 2147483647, %v1621_v16  ;;  %vm551_vm8 = vcmp.lt.f32.partialorder %v1621_v16, 0.0  ;;  %v562_v16 = vld [vmem:[#allocation2 + $0x8] sm:$0xff] }
 0x126   : > { %v487_v19 = vmul.f32 0.3275911, %v485_v18  ;;  %v539_v42 = vmul.f32 %v485_v18, %v485_v18 }
 0x127   : > { %v478_v21 = vpop.f32.mrf.mxu0 }
 0x128   : > { %v489_v22 = vadd.f32 1.0, %v487_v19  ;;  %v1626_v23 = vadd.f32 %v1055_v12, %v478_v21  ;;  %v541_v50 = vsub.f32 0.0, %v539_v42 }
 0x12a   : > { %1056 = vrcp.f32 %v489_v22  ;;  %v1630_v25 = vmul.f32 0.70710677, %v1626_v23  ;;  %v502_v34 = vand.u32 2147483648, %v489_v22  ;;  %v500_v36 = vand.u32 2147483647, %v489_v22 }
 0x12b   : > { %vm496_vm1 = vweird.f32 %v489_v22  ;;  %v543_v57 = vmul.f32 1.442695, %v541_v50 }
 0x12c   : > { %v486_v26 = vand.u32 2147483647, %v1630_v25  ;;  %v503_v39 = vor.u32 1.1754944e-38, %v502_v34  ;;  %vm501_vm3 = vcmp.eq.f32.partialorder %v500_v36, 8.507059e+37  ;;  %vm552_vm9 = vcmp.lt.f32.partialorder %v1630_v25, 0.0  ;;  %v561_v36 = vld [vmem:[#allocation2] sm:$0xff] }
 0x12e   : > { %v488_v28 = vmul.f32 0.3275911, %v486_v26  ;;  %v540_v59 = vmul.f32 %v486_v26, %v486_v26 }
 0x130   : > { %v1057_v29 = vpop.eup %1056  ;;  %v490_v31 = vadd.f32 1.0, %v488_v28  ;;  %v542_v1 = vsub.f32 0.0, %v540_v59 }
 0x131   : > { %v492_v30 = vmul.f32 %v1057_v29, %v489_v22  ;;  %vm497_vm0 = vweird.f32 %v1057_v29 }
 0x132   : > { %1058 = vrcp.f32 %v490_v31  ;;  %vm498_vm2 = vmor %vm496_vm1, %vm497_vm0  ;;  %v517_v48 = vand.u32 2147483648, %v490_v31  ;;  %v515_v52 = vand.u32 2147483647, %v490_v31  ;;  %vm511_vm5 = vweird.f32 %v490_v31 }
 0x133   : > { %v493_v33 = vsub.f32 1.0, %v492_v30  ;;  %1060 = vpow2.f32 %v543_v57  ;;  %v545_v6 = vmul.f32 1.442695, %v542_v1  ;;  %v481_v30 = vmul.f32 0.5, %v1617_v14 }
 0x134   : > { %v518_v55 = vor.u32 1.1754944e-38, %v517_v48  ;;  %vm516_vm7 = vcmp.eq.f32.partialorder %v515_v52, 8.507059e+37 }
 0x135   : > { %v494_v35 = vmul.f32 %v1057_v29, %v493_v33  ;;  %1062 = vpow2.f32 %v545_v6 }
 0x137   : > { %v495_v38 = vadd.f32 %v1057_v29, %v494_v35 }
 0x138   : > { %v1059_v40 = vpop.eup %1058 }
 0x139   : > { %v499_v41 = vsel %vm498_vm2, %v1057_v29, %v495_v38  ;;  %v507_v43 = vmul.f32 %v1059_v40, %v490_v31  ;;  %vm512_vm4 = vweird.f32 %v1059_v40  ;;  %v1061_v8 = vpop.eup %1060  ;;  %v482_v31 = vmul.f32 0.5, %v1626_v23 }
 0x13a   : > { %v504_v45 = vsel %vm501_vm3, %v503_v39, %v499_v41  ;;  %vm513_vm6 = vmor %vm511_vm5, %vm512_vm4 }
 0x13b   : > { %v521_v46 = vmul.f32 1.0614054, %v504_v45  ;;  %v508_v47 = vsub.f32 1.0, %v507_v43  ;;  %v1063_v21 = vpop.eup %1062 }
 0x13d   : > { %v523_v49 = vadd.f32 -1.4531521, %v521_v46  ;;  %v509_v51 = vmul.f32 %v1059_v40, %v508_v47 }
 0x13f   : > { %v525_v53 = vmul.f32 %v523_v49, %v504_v45  ;;  %v510_v54 = vadd.f32 %v1059_v40, %v509_v51 }
 0x141   : > { %v527_v56 = vadd.f32 1.4214138, %v525_v53  ;;  %v514_v58 = vsel %vm513_vm6, %v1059_v40, %v510_v54 }
 0x142   : > { %v519_v60 = vsel %vm516_vm7, %v518_v55, %v514_v58 }
 0x143   : > { %v529_v61 = vmul.f32 %v527_v56, %v504_v45  ;;  %v522_v62 = vmul.f32 1.0614054, %v519_v60 }
 0x145   : > { %v531_v63 = vadd.f32 -0.28449672, %v529_v61  ;;  %v524_v0 = vadd.f32 -1.4531521, %v522_v62 }
 0x147   : > { %v533_v2 = vmul.f32 %v531_v63, %v504_v45  ;;  %v526_v3 = vmul.f32 %v524_v0, %v519_v60 }
 0x149   : > { %v535_v4 = vadd.f32 0.2548296, %v533_v2  ;;  %v528_v5 = vadd.f32 1.4214138, %v526_v3 }
 0x14b   : > { %v537_v7 = vmul.f32 %v535_v4, %v504_v45  ;;  %v530_v11 = vmul.f32 %v528_v5, %v519_v60 }
 0x14d   : > { %v547_v12 = vmul.f32 %v1061_v8, %v537_v7  ;;  %v532_v13 = vadd.f32 -0.28449672, %v530_v11 }
 0x14f   : > { %v534_v15 = vmul.f32 %v532_v13, %v519_v60  ;;  %v549_v17 = vsub.f32 1.0, %v547_v12 }
 0x151   : > { %v536_v18 = vadd.f32 0.2548296, %v534_v15  ;;  %v553_v20 = vsub.f32 0.0, %v549_v17 }
 0x153   : > { %v538_v19 = vmul.f32 %v536_v18, %v519_v60  ;;  %v555_v26 = vsel %vm551_vm8, %v553_v20, %v549_v17 }
 0x154   : > { %v557_v28 = vadd.f32 1.0, %v555_v26 }
 0x155   : > { %v548_v22 = vmul.f32 %v1063_v21, %v538_v19 }
 0x156   : > { %v559_v33 = vmul.f32 %v557_v28, %v481_v30 }
 0x157   : > { %v550_v24 = vsub.f32 1.0, %v548_v22 }
 0x159   : > { %v554_v27 = vsub.f32 0.0, %v550_v24 }
 0x15b   : > { %v556_v29 = vsel %vm552_vm9, %v554_v27, %v550_v24 }
 0x15c   : > { %v558_v32 = vadd.f32 1.0, %v556_v29 }
 0x15e   : > { %v560_v34 = vmul.f32 %v558_v32, %v482_v31 }
 0x160   : > { %v563_v35 = vpack.c.bf16 %v560_v34, %v559_v33 }
 0x162   : > { %636 = vmatmul.bf16.vlgmr.msra.gmra.mxu1 %v563_v35 }
 0x1df   : > { %v637_v37 = vpop.f32.mrf.mxu1 }
 0x1e0   : > { %v642_v38 = vadd.f32 %v637_v37, %v561_v36 }
 0x1e2   : > { %644 = vst [vmem:[#allocation2] sm:$0xff] %v642_v38 }
 0x1e6   : > { %649 = sbr.rel (%p917_p12) target bundleno = 503 (0x1f7), region = 64 }
 0x1e7   : > { %v639_v39 = vpop.f32.mrf.mxu1 }
 0x1e8   : > { %v643_v40 = vadd.f32 %v639_v39, %v562_v16 }
 0x1ea   : > { %645 = vst [vmem:[#allocation2 + $0x8] sm:$0xff] %v643_v40 }
 0x1eb   : > { %v650_v25 = vld [vmem:[#allocation2] sm:$0xff] }
 0x1ec   : > { %v1064_v14 = vld [vmem:[%s1775_s23] ss:$0 sm:$0xff] }
 0x1ed   : > { %v656_v41 = vadd.f32 %v1064_v14, %v650_v25 }
 0x1ef   : > { %v658_v43 = vadd.f32 %v656_v41, %v1608_v9 }
 0x1f1   : > { %v651_v23 = vld [vmem:[#allocation2 + $0x8] sm:$0xff]  ;;  %660 = vst [vmem:[%s1604_s29] sm:$0xff] %v658_v43 }
 0x1f2   : > { %v657_v42 = vadd.f32 %v1064_v14, %v651_v23 }
 0x1f4   : > { %v659_v44 = vadd.f32 %v657_v42, %v1611_v10 }
 0x1f6   : > { %661 = vst [vmem:[%s1604_s29 + $0x8] sm:$0xff] %v659_v44 }
 0x1f7 PF: > { %s663_s24 = scalar_lea.sflag [#allocation5], %s1577_s1  ;;  %669 = sbr.rel (!%p1493_p4) target bundleno = 545 (0x221), region = 68 }
 0x1f8   : > { %s1777_s5 = sld [smem:[#allocation19_spill]] (%p1493_p4) }
 0x1fe   : > { %s919_s8 = sshll.u32 %s1777_s5, 1 }
 0x1ff   : > { %s671_s0 = ssub.s32 3, %s919_s8 }
 0x200   : > { %p672_p13 = scmp.lt.s32.totalorder %s671_s0, 2 }
 0x202   : > { %s1804_s0 = smov (!%p672_p13, %s671_s0), 2 }
 0x203   : > { %s920_s15 = sshll.u32 %s1804_s0, 3 }
 0x204   : > { %s675_s9 = ssub.s32 16, %s920_s15 }
 0x205   : > { %s676_s25 = sshll.u32 %s675_s9, 4 }
 0x206   : > { %677 = vsyncadd %s663_s24, %s676_s25  ;;  %p1658_p5 = scmp.ne.s32.totalorder %s920_s15, 0  ;;  %s945_s20 = sshll.u32 %s1777_s5, 4 }
 0x207   : > { %s1779_s16 = sld [smem:[#allocation30_spill]]  ;;  %s682_s18 = sshll.u32 %s1604_s29, 4  ;;  %s1667_s18 = int_to_ptr.vmem [resolvable:$true] %s682_s18 }
 0x208   : > { %s924_s13 = sshll.u32 %s1804_s0, 7  ;;  %s1188_s12 = sshra.s32 %s1667_s18, 4  ;;  %s1189_s12 = int_to_ptr.vmem [resolvable:$true] %s1188_s12 }
 0x209   : > { %s1190_s6 = sshrl.u32 %s924_s13, 4  ;;  %s1338_s17 = smov [#allocation11]  }
 0x20a   : > { %s1195_s21 = scalar_lea.vmem %s1189_s12, %s1190_s6  ;;  %s1199_s11 = scalar_lea.vmem %s1338_s17, 32 }
 0x20b   : > { %p1196_p4 = scmp.ne.s32.totalorder %s1189_s12, %s1195_s21  ;;  %p1201_p1 = scmp.lt.s32.totalorder %s1199_s11, %s1195_s21 }
 0x20d   : > { %s680_s7 = scalar_lea.hbm %s1779_s16, %s945_s20  ;;  %p1197_p8 = pnand %p1196_p4, %p1658_p5 }
 0x20e   : > { %s684_s14 = sshll.u32 %s680_s7, 4  ;;  %s1669_s14 = int_to_ptr.hbm [resolvable:$true] %s684_s14 }
 0x20f   : > { %p1198_p2 = pneg %p1197_p8 }
 0x211   : > { %p1203_p6 = pnand %p1201_p1, %p1198_p2 }
 0x213   : > { %1206 = shalt.err (!%p1203_p6)
}
 0x214   : > { %s1207_s29 = sshra.s32 %s1669_s14, 4  ;;  %s1218_s8 = scalar_lea.hbm %s1779_s16, 24  ;;  %s1208_s29 = int_to_ptr.hbm [resolvable:$true] %s1207_s29 }
 0x215   : > { %s1214_s23 = scalar_lea.hbm %s1208_s29, %s1190_s6  ;;  %p1219_p0 = scmp.lt.s32.totalorder %s1208_s29, %s1779_s16 }
 0x216   : > { %p1215_p9 = scmp.ne.s32.totalorder %s1208_s29, %s1214_s23  ;;  %p1220_p7 = scmp.lt.s32.totalorder %s1218_s8, %s1214_s23 }
 0x218   : > { %p1216_p3 = pnand %p1215_p9, %p1658_p5  ;;  %p1221_p12 = por %p1220_p7, %p1219_p0 }
 0x21a   : > { %p1217_p11 = pneg %p1216_p3 }
 0x21c   : > { %p1222_p13 = pnand %p1221_p12, %p1217_p11 }
 0x21e   : > { %1225 = shalt.err (!%p1222_p13)
}
 0x21f   : > { %s1339_s25 = smov 128   ;;  %s1340_s20 = smov 8  }
 0x220   : > { %690 = dma.vmem_to_hbm [thread:$0]  (%p1658_p5), %s1667_s18, %s924_s13, %s1669_s14, %s663_s24, %s1339_s25, %s1339_s25, %s1340_s20  }
 0x221 PF: > { %s1780_s10 = sld [smem:[#allocation17_spill]]  ;;  %p958_p4 = scmp.ge.s32.totalorder %s1329_s28, 2 }
 0x223   : > { %p955_p8 = pnand %p958_p4, %p1500_p10 }
 0x225   : > { %p956_p2 = pneg %p955_p8 }
 0x227   : > { %s699_s7 = sand.u32 1, %s1780_s10  }
 0x228   : > { %s700_s12 = scalar_lea.sflag [#allocation5], %s699_s7 }
 0x229   : > { %1284 = dma.done.wait (%p956_p2), %s700_s12, 256  }
 0x22a   : > { %1286 = vsyncadd (%p956_p2), %s700_s12, 4294967040  ;;  %s27_s28 = sadd.s32 1, %s1329_s28   ;;  %s1782_s1 = sld [smem:[#allocation16_spill]] }
 0x22b   : > { %p24_p1 = scmp.ge.s32.totalorder %s27_s28, 8   ;;  %s1783_s20 = sld [smem:[#allocation23_spill]] }
 0x22c   : > { %s1784_s24 = sld [smem:[#allocation18_spill]]  ;;  %s1789_s18 = smov %s1293_s19 }
 0x22d   : > { %s1785_s23 = sld [smem:[#allocation24_spill]]  ;;  %s1791_s21 = smov %s1305_s22 }
 0x22e   : > { %s1786_s25 = sld [smem:[#allocation20_spill]] }
 0x22f   : > { %s1787_s0 = sld [smem:[#allocation21_spill]] }
 0x230   : > { %s1788_s27 = sld [smem:[#allocation22_spill]]  ;;  %s1790_s19 = smov %s1782_s1 }
 0x231   :  { %26 = sbr.rel (!%p24_p1) target bundleno = 18 (0x12), region = 130 }
 0x232   : > { %s1792_s22 = smov %s1784_s24  ;;  %s1793_s24 = smov %s1321_s26 }
 0x235   : > { %s1794_s26 = smov %s1787_s0 }
 0x236   :  { %706 = vsyncpa [#allocation4], 1 }
 0x237   :  { %708 = vsyncpa [#allocation4 + $0x1], 1 }
 0x238   :  { %709 = vsyncpa [#allocation7], 1 }
 0x239   :  { %711 = vsyncpa [#allocation7 + $0x1], 1 }
 0x23a   :  { %712 = vsyncpa [#allocation10], 1 }
 0x23b   :  { %714 = vsyncpa [#allocation10 + $0x1], 1 }
 0x23c   :  { %715 = vsyncpa [#allocation5], 1 }
 0x23d   :  { %717 = vsyncpa [#allocation5 + $0x1], 1 }

</bundles_post_ra>
